<compile_context>
chip_gen: v7x
topology: tpu7x:2x2x1
jax: 0.10.0
libtpu: 0.0.40
codegen_flags: <defaults>
</compile_context>

<pallas_src>
import functools

import jax
import jax.numpy as jnp
from jax.experimental import pallas as pl
from jax.experimental.pallas import tpu as pltpu

N_MEL = 80
MEL_PAD = 128          # lane-dense width for the 80-channel mel outputs
BN_EPS = 1e-5


# ----------------------------------------------------------------------------
# Tiling helpers
# ----------------------------------------------------------------------------
def _row_tile(m, target=512):
    """Largest divisor of m that is <= target and a multiple of 8 (or m)."""
    if m <= target:
        return m
    for t in range(target, 7, -1):
        if m % t == 0 and t % 8 == 0:
            return t
    return m


def _col_tile(n, target=256):
    """Largest divisor of n that is <= target and a multiple of 128 (or n)."""
    if n <= target:
        return n
    for t in range(target, 127, -128):
        if n % t == 0:
            return t
    return n


def _time_chunk(t, target=32):
    """Timesteps per LSTM grid step: divisor of t, multiple of 8 (or t)."""
    if t <= target:
        return t
    for c in range(target, 7, -1):
        if t % c == 0 and c % 8 == 0:
            return c
    return t


# ----------------------------------------------------------------------------
# Pallas kernels
# ----------------------------------------------------------------------------
def _linear_kernel(x_ref, w_ref, b_ref, o_ref, *, act):
    # x: (tm, K) bf16 ; w: (K, N) bf16 ; b: (1, N) f32 ; o: (tm, N)
    y = jnp.dot(x_ref[...], w_ref[...],
                preferred_element_type=jnp.float32) + b_ref[...]
    if act == "relu":
        y = jnp.maximum(y, 0.0)
    elif act == "tanh":
        y = jnp.tanh(y)
    o_ref[...] = y.astype(o_ref.dtype)


def _conv_bn_act_kernel(x_ref, w_ref, b_ref, g_ref, beta_ref, *rest,
                        K, act, residual):
    # Conv1d(K, pad=(K-1)/2) as K shifted MXU matmuls accumulated in f32, then
    # single fused BatchNorm (batch stats, two-pass variance) + activation.
    #   x: (B, T+K-1, Cin) bf16  (time-padded slab, loaded once)
    #   w: (K, Cin, tn)    bf16  (per-tap weight slices)
    #   b/g/beta: (1, tn)  f32
    #   o / res: (B*T, tn)
    if residual:
        res_ref, o_ref = rest
    else:
        (o_ref,) = rest
    B, Tp, Cin = x_ref.shape
    T = Tp - (K - 1)
    xp = x_ref[...]                                     # whole slab in VMEM
    acc = None
    for k in range(K):                                  # K=5 static taps
        xk = xp[:, k:k + T, :].reshape(B * T, Cin)
        yk = jnp.dot(xk, w_ref[k], preferred_element_type=jnp.float32)
        acc = yk if acc is None else acc + yk
    y = acc + b_ref[...]
    # BatchNorm over the (B*T) rows — two-pass (mean-subtracted) variance.
    inv_n = 1.0 / (B * T)
    mean = jnp.sum(y, axis=0, keepdims=True) * inv_n
    yc = y - mean
    var = jnp.sum(yc * yc, axis=0, keepdims=True) * inv_n
    y = yc * jax.lax.rsqrt(var + BN_EPS) * g_ref[...] + beta_ref[...]
    if act == "relu":
        y = jnp.maximum(y, 0.0)
    elif act == "tanh":
        y = jnp.tanh(y)
    if residual:
        y = y + res_ref[...]
    o_ref[...] = y.astype(o_ref.dtype)


def _lstm_chunk_kernel(gx_ref, whh_ref, o_ref, h_scr, c_scr, *, reverse):
    # gx_ref block: (B, Tc, 4H) bf16 (precomputed x @ W_ih + b_ih + b_hh)
    # whh_ref:      (H, 4H) bf16
    # o_ref block:  (B, Tc, H) ; h/c scratch: (B, H) f32 carried across grid.
    @pl.when(pl.program_id(0) == 0)
    def _():
        h_scr[...] = jnp.zeros_like(h_scr)
        c_scr[...] = jnp.zeros_like(c_scr)

    Tc = gx_ref.shape[1]
    H = whh_ref.shape[0]
    whh = whh_ref[...]
    h = h_scr[...]
    c = c_scr[...]
    for j in range(Tc):                                  # static unroll
        tl = Tc - 1 - j if reverse else j
        g_x = gx_ref[:, tl, :].astype(jnp.float32)       # (B, 4H)
        gates = g_x + jnp.dot(h.astype(jnp.bfloat16), whh,
                              preferred_element_type=jnp.float32)
        i = jax.nn.sigmoid(gates[:, 0:H])
        f = jax.nn.sigmoid(gates[:, H:2 * H])
        g = jnp.tanh(gates[:, 2 * H:3 * H])
        o = jax.nn.sigmoid(gates[:, 3 * H:4 * H])
        c = f * c + i * g
        h = o * jnp.tanh(c)
        o_ref[:, tl, :] = h.astype(o_ref.dtype)          # per-step store
    h_scr[...] = h
    c_scr[...] = c


def _self_attn_kernel(x_ref, wq_ref, wk_ref, wv_ref, bq_ref, bk_ref, bv_ref,
                      mask_ref, o_ref):
    # Fused QKV projection + outer-product energy + mask + softmax + value mix
    # for ALL (code-chunk, batch) rows at once.  x: (M, D); mask: (M, D, D).
    x = x_ref[...].astype(jnp.bfloat16)
    q = jnp.dot(x, wq_ref[...], preferred_element_type=jnp.float32) + bq_ref[...]
    k = jnp.dot(x, wk_ref[...], preferred_element_type=jnp.float32) + bk_ref[...]
    v = jnp.dot(x, wv_ref[...], preferred_element_type=jnp.float32) + bv_ref[...]
    M, D = q.shape
    qe = jax.lax.broadcast_in_dim(q, (M, D, D), (0, 1))   # energy[m,i,j]=q[m,i]
    ke = jax.lax.broadcast_in_dim(k, (M, D, D), (0, 2))   #            *k[m,j]
    energy = qe * ke
    energy = jnp.where(mask_ref[...] != 0.0, -1e9, energy)  # masked_fill(-1e9)
    emax = jnp.max(energy, axis=-1, keepdims=True)
    e = jnp.exp(energy - emax)
    attn = e / jnp.sum(e, axis=-1, keepdims=True)            # softmax(dim=-1)
    ve = jax.lax.broadcast_in_dim(v, (M, D, D), (0, 2))
    o_ref[...] = jnp.sum(attn * ve, axis=-1)                  # (M, D)


def _repara_kernel(c_ref, w1_ref, b1_ref, w2_ref, b2_ref,
                   wmu_ref, bmu_ref, wlv_ref, blv_ref, eps_ref, o_ref):
    # Fused: Linear+ReLU, Linear+ReLU, mu/logvar heads, reparameterization.
    h = jnp.maximum(jnp.dot(c_ref[...].astype(jnp.bfloat16), w1_ref[...],
                            preferred_element_type=jnp.float32) + b1_ref[...], 0.0)
    h = jnp.maximum(jnp.dot(h.astype(jnp.bfloat16), w2_ref[...],
                            preferred_element_type=jnp.float32) + b2_ref[...], 0.0)
    hb = h.astype(jnp.bfloat16)
    mu = jnp.dot(hb, wmu_ref[...], preferred_element_type=jnp.float32) + bmu_ref[...]
    lv = jnp.dot(hb, wlv_ref[...], preferred_element_type=jnp.float32) + blv_ref[...]
    o_ref[...] = mu + eps_ref[...] * jnp.exp(0.5 * lv)


# ----------------------------------------------------------------------------
# Wrappers
# ----------------------------------------------------------------------------
def linear(x, p, act="none", out_dtype=jnp.bfloat16):
    # p["w"]: (in, out) bf16 (pre-transposed); p["b"]: (1, out) f32
    orig = x.shape
    x2 = x.reshape(-1, orig[-1]).astype(jnp.bfloat16)
    M, Kd = x2.shape
    N = p["w"].shape[1]
    tm = _row_tile(M)
    y = pl.pallas_call(
        functools.partial(_linear_kernel, act=act),
        grid=(M // tm,),
        in_specs=[pl.BlockSpec((tm, Kd), lambda i: (i, 0)),
                  pl.BlockSpec((Kd, N), lambda i: (0, 0)),
                  pl.BlockSpec((1, N), lambda i: (0, 0))],
        out_specs=pl.BlockSpec((tm, N), lambda i: (i, 0)),
        out_shape=jax.ShapeDtypeStruct((M, N), out_dtype),
        compiler_params=pltpu.CompilerParams(dimension_semantics=("parallel",)),
    )(x2, p["w"], p["b"])
    return y.reshape(orig[:-1] + (N,))


def conv_bn_act(x, p, act, residual=None, out_dtype=jnp.bfloat16):
    # x: (B, T, Cin); p["w"]: (K, Cin, Cout) bf16.  Output-channel tiled grid.
    # TODO(synk): for very long T on v7x (64 MiB VMEM), row-tile B*T with a
    # cross-tile BN-stats reduction instead of keeping the full slab resident.
    B, T, cin_in = x.shape
    K = p["k"]
    Cin = p["w"].shape[1]
    Cout = p["w"].shape[2]
    pad = (K - 1) // 2
    xb = x.astype(jnp.bfloat16)
    if Cin > cin_in:                       # zero lane-pad of input channels
        xb = jnp.pad(xb, ((0, 0), (0, 0), (0, Cin - cin_in)))
    xp = jnp.pad(xb, ((0, 0), (pad, pad), (0, 0)))     # time padding only
    Tp = T + 2 * pad

    tn = _col_tile(Cout)
    in_specs = [
        pl.BlockSpec((B, Tp, Cin), lambda j: (0, 0, 0)),
        pl.BlockSpec((K, Cin, tn), lambda j: (0, 0, j)),
        pl.BlockSpec((1, tn), lambda j: (0, j)),
        pl.BlockSpec((1, tn), lambda j: (0, j)),
        pl.BlockSpec((1, tn), lambda j: (0, j)),
    ]
    args = [xp, p["w"], p["b"], p["gamma"], p["beta"]]
    if residual is not None:
        in_specs.append(pl.BlockSpec((B * T, tn), lambda j: (0, j)))
        args.append(residual.reshape(B * T, Cout).astype(jnp.float32))

    y = pl.pallas_call(
        functools.partial(_conv_bn_act_kernel, K=K, act=act,
                          residual=residual is not None),
        grid=(Cout // tn,),
        in_specs=in_specs,
        out_specs=pl.BlockSpec((B * T, tn), lambda j: (0, j)),
        out_shape=jax.ShapeDtypeStruct((B * T, Cout), out_dtype),
        compiler_params=pltpu.CompilerParams(
            dimension_semantics=("parallel",),
            vmem_limit_bytes=64 * 1024 * 1024),
    )(*args)
    return y.reshape(B, T, Cout)


def lstm_layer(x, p, reverse=False, out_dtype=jnp.bfloat16):
    # Single unidirectional LSTM layer; x: (B, T, In) -> (B, T, H).
    # TODO(synk): on v7x the fwd/bwd directions could be fused into one call
    # with a leading size-2 core-parallel grid axis (one direction per TC).
    B, T, _ = x.shape
    H = p["w_hh"].shape[0]
    # input->hidden projection for all timesteps in one row-tiled matmul
    gates_x = linear(x, {"w": p["w_ih"], "b": p["b"]})        # (B, T, 4H) bf16
    Tc = _time_chunk(T)
    nb = T // Tc
    if reverse:
        idx = lambda c: (0, nb - 1 - c, 0)    # read/write chunks back-to-front
    else:
        idx = lambda c: (0, c, 0)
    return pl.pallas_call(
        functools.partial(_lstm_chunk_kernel, reverse=reverse),
        grid=(nb,),
        in_specs=[pl.BlockSpec((B, Tc, 4 * H), idx),
                  pl.BlockSpec((H, 4 * H), lambda c: (0, 0))],
        out_specs=pl.BlockSpec((B, Tc, H), idx),
        out_shape=jax.ShapeDtypeStruct((B, T, H), out_dtype),
        scratch_shapes=[pltpu.VMEM((B, H), jnp.float32),
                        pltpu.VMEM((B, H), jnp.float32)],
        compiler_params=pltpu.CompilerParams(dimension_semantics=("arbitrary",)),
    )(gates_x, p["w_hh"])


def self_attn_forward(codes_2d, p, key):
    # codes_2d: (M, D) with M = n_codes * B (all code chunks batched together).
    M, D = codes_2d.shape
    # Dropout-style mask generated in plain JAX (the TPU hardware PRNG is not
    # available in interpret mode); mirrors torch `uniform_() > 0.9`.
    mask = (jax.random.uniform(key, (M, D, D)) > 0.9).astype(jnp.float32)
    vspec = pl.BlockSpec(memory_space=pltpu.MemorySpace.VMEM)
    return pl.pallas_call(
        _self_attn_kernel,
        out_shape=jax.ShapeDtypeStruct((M, D), jnp.float32),
        in_specs=[vspec] * 8,
        out_specs=vspec,
    )(codes_2d, p["q"]["w"], p["k"]["w"], p["v"]["w"],
      p["q"]["b"], p["k"]["b"], p["v"]["b"], mask)


def repara_forward(c, p, key):
    B, E = c.shape
    eps = jax.random.normal(key, (B, E), jnp.float32)
    vspec = pl.BlockSpec(memory_space=pltpu.MemorySpace.VMEM)
    return pl.pallas_call(
        _repara_kernel,
        out_shape=jax.ShapeDtypeStruct((B, E), jnp.float32),
        in_specs=[vspec] * 10,
        out_specs=vspec,
    )(c.astype(jnp.float32),
      p["l1"]["w"], p["l1"]["b"], p["l2"]["w"], p["l2"]["b"],
      p["mu"]["w"], p["mu"]["b"], p["lv"]["w"], p["lv"]["b"], eps)


# ----------------------------------------------------------------------------
# Parameter initialization (deterministic, synthetic).  Weights are stored
# pre-transposed (linears (in,out), convs (K,Cin,Cout), LSTM (in,4H)/(H,4H))
# and in bf16 so no per-call transpose/cast HLOs are emitted.  The 80-channel
# mel heads are zero-padded to 128 output lanes for unmasked full-lane stores.
# ----------------------------------------------------------------------------
class KeyGen:
    def __init__(self, key):
        self.key = key

    def __call__(self):
        self.key, sub = jax.random.split(self.key)
        return sub


def _linear_p(kg, in_dim, out_dim, out_pad=None):
    out_p = out_pad or out_dim
    w = 0.05 * jax.random.normal(kg(), (in_dim, out_dim))
    w = jnp.pad(w, ((0, 0), (0, out_p - out_dim))).astype(jnp.bfloat16)
    return dict(w=w, b=jnp.zeros((1, out_p), jnp.float32))


def _conv_p(kg, cin, cout, k=5, cin_pad=None, cout_pad=None):
    # Equivalent to PyTorch Conv1d weight (Cout, Cin, K) via permute(2, 1, 0).
    cin_p = cin_pad or cin
    cout_p = cout_pad or cout
    w = 0.05 * jax.random.normal(kg(), (k, cin, cout))
    w = jnp.pad(w, ((0, 0), (0, cin_p - cin),
                    (0, cout_p - cout))).astype(jnp.bfloat16)
    return dict(w=w,
                b=jnp.zeros((1, cout_p), jnp.float32),
                gamma=jnp.ones((1, cout_p), jnp.float32),
                beta=jnp.zeros((1, cout_p), jnp.float32),
                k=k)


def _lstm_p(kg, in_dim, hidden):
    return dict(w_ih=(0.05 * jax.random.normal(kg(), (in_dim, 4 * hidden))
                      ).astype(jnp.bfloat16),
                w_hh=(0.05 * jax.random.normal(kg(), (hidden, 4 * hidden))
                      ).astype(jnp.bfloat16),
                b=jnp.zeros((1, 4 * hidden), jnp.float32))   # b_ih + b_hh folded


def init_generator(key, dim_neck, dim_emb, dim_pre, freq):
    kg = KeyGen(key)
    params = dict(dim_neck=dim_neck, freq=freq)
    # Encoder
    params["enc_conv"] = [_conv_p(kg, N_MEL if i == 0 else 512, 512) for i in range(3)]
    params["enc_lstm"] = []
    for layer in range(2):
        in_dim = 512 if layer == 0 else 2 * dim_neck
        params["enc_lstm"].append([_lstm_p(kg, in_dim, dim_neck),    # forward dir
                                   _lstm_p(kg, in_dim, dim_neck)])   # backward dir
    # Self attention
    D = 2 * dim_neck
    params["attn"] = dict(q=_linear_p(kg, D, D), k=_linear_p(kg, D, D),
                          v=_linear_p(kg, D, D))
    # Reparameterization (Repara(dim_emb, dim_emb // 2, dim_emb))
    hid = dim_emb // 2
    params["repar"] = dict(l1=_linear_p(kg, dim_emb, hid),
                           l2=_linear_p(kg, hid, dim_emb),
                           mu=_linear_p(kg, dim_emb, dim_emb),
                           lv=_linear_p(kg, dim_emb, dim_emb))
    # Decoder
    params["dec_lstm1"] = _lstm_p(kg, 2 * dim_neck + dim_emb, dim_pre)
    params["dec_conv"] = [_conv_p(kg, dim_pre, dim_pre) for _ in range(3)]
    params["dec_lstm2"] = [_lstm_p(kg, dim_pre, 1024), _lstm_p(kg, 1024, 1024)]
    params["dec_proj"] = _linear_p(kg, 1024, N_MEL, out_pad=MEL_PAD)
    # Postnet (first conv consumes the 128-lane-padded mel; last emits it)
    post = [_conv_p(kg, N_MEL, 512, cin_pad=MEL_PAD)]
    post += [_conv_p(kg, 512, 512) for _ in range(3)]
    post += [_conv_p(kg, 512, N_MEL, cout_pad=MEL_PAD)]
    params["postnet"] = post
    return params


# ----------------------------------------------------------------------------
# Generator forward
# ----------------------------------------------------------------------------
def generator_forward(params, x, c_org, c_trg, rng):
    # x: (B, T, 80), c_org/c_trg: (B, dim_emb)
    del c_org  # reference passes it through repar but never uses the result
    B, T, _ = x.shape
    dim_neck = params["dim_neck"]
    freq = params["freq"]

    # ---------------- Encoder ----------------
    h = x
    for cp in params["enc_conv"]:
        h = conv_bn_act(h, cp, act="relu")                  # (B, T, 512) bf16

    out = h
    for layer in params["enc_lstm"]:          # 2-layer bidirectional LSTM
        fwd = lstm_layer(out, layer[0], reverse=False)
        bwd = lstm_layer(out, layer[1], reverse=True)   # reverse via index_map
        out = jnp.concatenate([fwd, bwd], axis=-1)
    out_forward = out[:, :, :dim_neck]
    out_backward = out[:, :, dim_neck:]

    codes = []
    for i in range(0, T, freq):
        codes.append(jnp.concatenate([out_forward[:, i + freq - 1, :],
                                      out_backward[:, i, :]], axis=-1))
    codes_cat = jnp.concatenate(codes, axis=-1).astype(jnp.float32)

    if c_trg is None:
        return codes_cat

    # ------------- attention (all code chunks in one fused call) -------------
    D = 2 * dim_neck
    n_codes = len(codes)
    n_rep = T // n_codes
    codes_2d = jnp.stack(codes, axis=0).reshape(n_codes * B, D)
    rng, k_attn, k_trg = jax.random.split(rng, 3)
    attn_out = self_attn_forward(codes_2d, params["attn"], k_attn)
    attn_out = attn_out.reshape(n_codes, B, D).transpose(1, 0, 2)   # (B, n_codes, D)
    code_exp = jnp.broadcast_to(attn_out[:, :, None, :],
                                (B, n_codes, n_rep, D)).reshape(B, T, D)

    # ---------------- reparameterization (target speaker only) --------------
    c_trg_z = repara_forward(c_trg, params["repar"], k_trg)

    encoder_outputs = jnp.concatenate(
        [code_exp, jnp.broadcast_to(c_trg_z[:, None, :], (B, T, c_trg_z.shape[-1]))],
        axis=-1)

    # ---------------- Decoder ----------------
    d = lstm_layer(encoder_outputs, params["dec_lstm1"])
    for cp in params["dec_conv"]:
        d = conv_bn_act(d, cp, act="relu")
    d = lstm_layer(d, params["dec_lstm2"][0])
    d = lstm_layer(d, params["dec_lstm2"][1])
    # lane-dense (128-wide) projection; true mel is the first 80 channels
    mel_padded = linear(d, params["dec_proj"], out_dtype=jnp.float32)   # (B,T,128)
    mel_outputs = mel_padded[:, :, :N_MEL]

    # --------- Postnet (last conv fuses the residual add with mel) ----------
    p_x = mel_padded                    # padded lanes are exactly zero
    n_post = len(params["postnet"])
    for i, cp in enumerate(params["postnet"]):
        last = i == n_post - 1
        p_x = conv_bn_act(p_x, cp,
                          act="none" if last else "tanh",
                          residual=mel_padded if last else None,
                          out_dtype=jnp.float32 if last else jnp.bfloat16)
    mel_outputs_postnet = p_x[:, :, :N_MEL]

    return (mel_outputs[:, None, :, :],
            mel_outputs_postnet[:, None, :, :],
            codes_cat)


# ----------------------------------------------------------------------------
if __name__ == "__main__":
    dim_neck, dim_emb, dim_pre, freq = 8, 16, 32, 4
    B, T = 2, 8

    key = jax.random.PRNGKey(0)
    pkey, xkey, okey, tkey, fkey = jax.random.split(key, 5)

    params = init_generator(pkey, dim_neck, dim_emb, dim_pre, freq)
    x = jax.random.normal(xkey, (B, T, N_MEL), jnp.float32)
    c_org = jax.random.normal(okey, (B, dim_emb), jnp.float32)
    c_trg = jax.random.normal(tkey, (B, dim_emb), jnp.float32)

    mel, mel_post, codes = generator_forward(params, x, c_org, c_trg, fkey)
    jax.block_until_ready((mel, mel_post, codes))

    assert mel.shape == (B, 1, T, N_MEL)
    assert mel_post.shape == (B, 1, T, N_MEL)
    assert codes.shape == (B, (T // freq) * 2 * dim_neck)
    print("KERNEL_OK")
</pallas_src>

<mosaic_0001>
module attributes {stable_mosaic.version = 11 : i64} {
  func.func @_conv_bn_act_kernel(%arg0: i32, %arg1: memref<2x12x80xbf16, #tpu.memory_space<vmem>>, %arg2: memref<5x80x256xbf16, #tpu.memory_space<vmem>>, %arg3: memref<1x256xf32, #tpu.memory_space<vmem>>, %arg4: memref<1x256xf32, #tpu.memory_space<vmem>>, %arg5: memref<1x256xf32, #tpu.memory_space<vmem>>, %arg6: memref<16x256xbf16, #tpu.memory_space<vmem>>) attributes {dimension_semantics = [#tpu.dimension_semantics<parallel>], iteration_bounds = array<i64: 2>, scalar_prefetch = 0 : i64, scratch_operands = 0 : i64, tpu.core_type = #tpu.core_type<tc>, window_params = [{pipeline_mode = #tpu.pipeline_mode<synchronous>, transform_indices = @transform_0, window_bounds = array<i64: 2, 12, 80>}, {transform_indices = @transform_1, window_bounds = array<i64: 5, 80, 256>}, {transform_indices = @transform_2, window_bounds = array<i64: 1, 256>}, {transform_indices = @transform_3, window_bounds = array<i64: 1, 256>}, {transform_indices = @transform_4, window_bounds = array<i64: 1, 256>}, {transform_indices = @transform_5, window_bounds = array<i64: 16, 256>}]} {
    %c0 = arith.constant 0 : index
    %c0_0 = arith.constant 0 : index
    %c0_1 = arith.constant 0 : index
    %0 = vector.load %arg1[%c0, %c0_0, %c0_1] : memref<2x12x80xbf16, #tpu.memory_space<vmem>>, vector<2x12x80xbf16>
    %1 = vector.extract_strided_slice %0 {offsets = [0, 0, 0], sizes = [2, 8, 80], strides = [1, 1, 1]} : vector<2x12x80xbf16> to vector<2x8x80xbf16>
    %2 = vector.shape_cast %1 : vector<2x8x80xbf16> to vector<16x80xbf16>
    %c0_2 = arith.constant 0 : index
    %c0_3 = arith.constant 0 : index
    %c0_4 = arith.constant 0 : index
    %3 = vector.load %arg2[%c0_2, %c0_3, %c0_4] : memref<5x80x256xbf16, #tpu.memory_space<vmem>>, vector<1x80x256xbf16>
    %4 = vector.shape_cast %3 : vector<1x80x256xbf16> to vector<80x256xbf16>
    %cst = arith.constant dense<0.000000e+00> : vector<16x256xf32>
    %5 = tpu.matmul %2, %4, %cst {dimension_numbers = #tpu.dot_dimension_numbers<[1], [0], [0], [1], [0, 0, 1, 1], [], []>} : vector<16x80xbf16>, vector<80x256xbf16>, vector<16x256xf32> -> vector<16x256xf32>
    %6 = vector.extract_strided_slice %0 {offsets = [0, 1, 0], sizes = [2, 8, 80], strides = [1, 1, 1]} : vector<2x12x80xbf16> to vector<2x8x80xbf16>
    %7 = vector.shape_cast %6 : vector<2x8x80xbf16> to vector<16x80xbf16>
    %c1 = arith.constant 1 : index
    %c0_5 = arith.constant 0 : index
    %c0_6 = arith.constant 0 : index
    %8 = vector.load %arg2[%c1, %c0_5, %c0_6] : memref<5x80x256xbf16, #tpu.memory_space<vmem>>, vector<1x80x256xbf16>
    %9 = vector.shape_cast %8 : vector<1x80x256xbf16> to vector<80x256xbf16>
    %cst_7 = arith.constant dense<0.000000e+00> : vector<16x256xf32>
    %10 = tpu.matmul %7, %9, %cst_7 {dimension_numbers = #tpu.dot_dimension_numbers<[1], [0], [0], [1], [0, 0, 1, 1], [], []>} : vector<16x80xbf16>, vector<80x256xbf16>, vector<16x256xf32> -> vector<16x256xf32>
    %11 = arith.addf %5, %10 : vector<16x256xf32>
    %12 = vector.extract_strided_slice %0 {offsets = [0, 2, 0], sizes = [2, 8, 80], strides = [1, 1, 1]} : vector<2x12x80xbf16> to vector<2x8x80xbf16>
    %13 = vector.shape_cast %12 : vector<2x8x80xbf16> to vector<16x80xbf16>
    %c2 = arith.constant 2 : index
    %c0_8 = arith.constant 0 : index
    %c0_9 = arith.constant 0 : index
    %14 = vector.load %arg2[%c2, %c0_8, %c0_9] : memref<5x80x256xbf16, #tpu.memory_space<vmem>>, vector<1x80x256xbf16>
    %15 = vector.shape_cast %14 : vector<1x80x256xbf16> to vector<80x256xbf16>
    %cst_10 = arith.constant dense<0.000000e+00> : vector<16x256xf32>
    %16 = tpu.matmul %13, %15, %cst_10 {dimension_numbers = #tpu.dot_dimension_numbers<[1], [0], [0], [1], [0, 0, 1, 1], [], []>} : vector<16x80xbf16>, vector<80x256xbf16>, vector<16x256xf32> -> vector<16x256xf32>
    %17 = arith.addf %11, %16 : vector<16x256xf32>
    %18 = vector.extract_strided_slice %0 {offsets = [0, 3, 0], sizes = [2, 8, 80], strides = [1, 1, 1]} : vector<2x12x80xbf16> to vector<2x8x80xbf16>
    %19 = vector.shape_cast %18 : vector<2x8x80xbf16> to vector<16x80xbf16>
    %c3 = arith.constant 3 : index
    %c0_11 = arith.constant 0 : index
    %c0_12 = arith.constant 0 : index
    %20 = vector.load %arg2[%c3, %c0_11, %c0_12] : memref<5x80x256xbf16, #tpu.memory_space<vmem>>, vector<1x80x256xbf16>
    %21 = vector.shape_cast %20 : vector<1x80x256xbf16> to vector<80x256xbf16>
    %cst_13 = arith.constant dense<0.000000e+00> : vector<16x256xf32>
    %22 = tpu.matmul %19, %21, %cst_13 {dimension_numbers = #tpu.dot_dimension_numbers<[1], [0], [0], [1], [0, 0, 1, 1], [], []>} : vector<16x80xbf16>, vector<80x256xbf16>, vector<16x256xf32> -> vector<16x256xf32>
    %23 = arith.addf %17, %22 : vector<16x256xf32>
    %24 = vector.extract_strided_slice %0 {offsets = [0, 4, 0], sizes = [2, 8, 80], strides = [1, 1, 1]} : vector<2x12x80xbf16> to vector<2x8x80xbf16>
    %25 = vector.shape_cast %24 : vector<2x8x80xbf16> to vector<16x80xbf16>
    %c4 = arith.constant 4 : index
    %c0_14 = arith.constant 0 : index
    %c0_15 = arith.constant 0 : index
    %26 = vector.load %arg2[%c4, %c0_14, %c0_15] : memref<5x80x256xbf16, #tpu.memory_space<vmem>>, vector<1x80x256xbf16>
    %27 = vector.shape_cast %26 : vector<1x80x256xbf16> to vector<80x256xbf16>
    %cst_16 = arith.constant dense<0.000000e+00> : vector<16x256xf32>
    %28 = tpu.matmul %25, %27, %cst_16 {dimension_numbers = #tpu.dot_dimension_numbers<[1], [0], [0], [1], [0, 0, 1, 1], [], []>} : vector<16x80xbf16>, vector<80x256xbf16>, vector<16x256xf32> -> vector<16x256xf32>
    %29 = arith.addf %23, %28 : vector<16x256xf32>
    %c0_17 = arith.constant 0 : index
    %c0_18 = arith.constant 0 : index
    %30 = vector.load %arg3[%c0_17, %c0_18] : memref<1x256xf32, #tpu.memory_space<vmem>>, vector<1x256xf32>
    %31 = vector.broadcast %30 : vector<1x256xf32> to vector<16x256xf32>
    %32 = arith.addf %29, %31 : vector<16x256xf32>
    %cst_19 = arith.constant dense<0.000000e+00> : vector<256xf32>
    %33 = vector.multi_reduction <add>, %32, %cst_19 [0] : vector<16x256xf32> to vector<256xf32>
    %34 = vector.shape_cast %33 : vector<256xf32> to vector<1x256xf32>
    %cst_20 = arith.constant 6.250000e-02 : f32
    %35 = vector.broadcast %cst_20 : f32 to vector<1x256xf32>
    %36 = arith.mulf %34, %35 : vector<1x256xf32>
    %37 = vector.broadcast %36 : vector<1x256xf32> to vector<16x256xf32>
    %38 = arith.subf %32, %37 : vector<16x256xf32>
    %39 = arith.mulf %38, %38 : vector<16x256xf32>
    %cst_21 = arith.constant dense<0.000000e+00> : vector<256xf32>
    %40 = vector.multi_reduction <add>, %39, %cst_21 [0] : vector<16x256xf32> to vector<256xf32>
    %41 = vector.shape_cast %40 : vector<256xf32> to vector<1x256xf32>
    %cst_22 = arith.constant 6.250000e-02 : f32
    %42 = vector.broadcast %cst_22 : f32 to vector<1x256xf32>
    %43 = arith.mulf %41, %42 : vector<1x256xf32>
    %cst_23 = arith.constant 9.99999974E-6 : f32
    %44 = vector.broadcast %cst_23 : f32 to vector<1x256xf32>
    %45 = arith.addf %43, %44 : vector<1x256xf32>
    %46 = math.rsqrt %45 : vector<1x256xf32>
    %47 = vector.broadcast %46 : vector<1x256xf32> to vector<16x256xf32>
    %48 = arith.mulf %38, %47 : vector<16x256xf32>
    %c0_24 = arith.constant 0 : index
    %c0_25 = arith.constant 0 : index
    %49 = vector.load %arg4[%c0_24, %c0_25] : memref<1x256xf32, #tpu.memory_space<vmem>>, vector<1x256xf32>
    %50 = vector.broadcast %49 : vector<1x256xf32> to vector<16x256xf32>
    %51 = arith.mulf %48, %50 : vector<16x256xf32>
    %c0_26 = arith.constant 0 : index
    %c0_27 = arith.constant 0 : index
    %52 = vector.load %arg5[%c0_26, %c0_27] : memref<1x256xf32, #tpu.memory_space<vmem>>, vector<1x256xf32>
    %53 = vector.broadcast %52 : vector<1x256xf32> to vector<16x256xf32>
    %54 = arith.addf %51, %53 : vector<16x256xf32>
    %cst_28 = arith.constant 0.000000e+00 : f32
    %55 = vector.broadcast %cst_28 : f32 to vector<16x256xf32>
    %56 = arith.maximumf %54, %55 : vector<16x256xf32>
    %57 = arith.truncf %56 : vector<16x256xf32> to vector<16x256xbf16>
    %c0_29 = arith.constant 0 : index
    %c0_30 = arith.constant 0 : index
    %58 = vector.load %arg6[%c0_29, %c0_30] : memref<16x256xbf16, #tpu.memory_space<vmem>>, vector<16x256xbf16>
    tpu.vector_store %arg6[%c0_29, %c0_30], %57 {strides = array<i32>} : memref<16x256xbf16, #tpu.memory_space<vmem>>, vector<16x256xbf16>,
    return
  }
  func.func @transform_0(%arg0: i32) -> (i32, i32, i32) {
    %c0_i32 = arith.constant 0 : i32
    %c0_i32_0 = arith.constant 0 : i32
    %c0_i32_1 = arith.constant 0 : i32
    %c0_i32_2 = arith.constant 0 : i32
    return %c0_i32, %c0_i32_0, %c0_i32_1 : i32, i32, i32
  }
  func.func @transform_1(%arg0: i32) -> (i32, i32, i32) {
    %c0_i32 = arith.constant 0 : i32
    %c0_i32_0 = arith.constant 0 : i32
    %c0_i32_1 = arith.constant 0 : i32
    return %c0_i32, %c0_i32_0, %arg0 : i32, i32, i32
  }
  func.func @transform_2(%arg0: i32) -> (i32, i32) {
    %c0_i32 = arith.constant 0 : i32
    %c0_i32_0 = arith.constant 0 : i32
    return %c0_i32, %arg0 : i32, i32
  }
  func.func @transform_3(%arg0: i32) -> (i32, i32) {
    %c0_i32 = arith.constant 0 : i32
    %c0_i32_0 = arith.constant 0 : i32
    return %c0_i32, %arg0 : i32, i32
  }
  func.func @transform_4(%arg0: i32) -> (i32, i32) {
    %c0_i32 = arith.constant 0 : i32
    %c0_i32_0 = arith.constant 0 : i32
    return %c0_i32, %arg0 : i32, i32
  }
  func.func @transform_5(%arg0: i32) -> (i32, i32) {
    %c0_i32 = arith.constant 0 : i32
    %c0_i32_0 = arith.constant 0 : i32
    return %c0_i32, %arg0 : i32, i32
  }
}

</mosaic_0001>

<bundles_post_ra>
// kernel: tpu_custom_call.1
= control target key start
LH: loop header
LB: loop body
LE: loop exit
PB: predicated region body
PF: predicated region fallthrough
CT: control target
= control target key end

     0   :  { %s2309_s0 = inlined_call_operand.hbm [shape: bf16[2,12,80], index: 0, kind: input, shape index: {}]   ;;  %s2310_s1 = inlined_call_operand.hbm [shape: bf16[5,80,512], index: 1, kind: input, shape index: {}]   ;;  %s2311_s2 = inlined_call_operand.hbm [shape: f32[1,512], index: 2, kind: input, shape index: {}]   ;;  %s2312_s3 = inlined_call_operand.hbm [shape: f32[1,512], index: 3, kind: input, shape index: {}]   ;;  %s2313_s4 = inlined_call_operand.hbm [shape: f32[1,512], index: 4, kind: input, shape index: {}]   ;;  %s2314_s5 = inlined_call_operand.hbm [shape: bf16[16,512], index: 5, kind: output, shape index: {}]  }
   0x1   :  { %2328 = sst [smem:[#allocation19_spill]] %s2310_s1 }
   0x2   :  { %2329 = sst [smem:[#allocation20_spill]] %s2312_s3 }
   0x3   :  { %10 = vsyncpa [#allocation3], 0 }
   0x4   :  { %11 = vsyncpa [#allocation6], 0 }
   0x5   :  { %13 = vsyncpa [#allocation6 + $0x1], 0 }
   0x6   :  { %14 = vsyncpa [#allocation9], 0 }
   0x7   :  { %16 = vsyncpa [#allocation9 + $0x1], 0 }
   0x8   :  { %17 = vsyncpa [#allocation4], 0 }
   0x9   :  { %19 = vsyncpa [#allocation4 + $0x1], 0  ;;  %s1881_s18 = smov 0   ;;  %s1883_s19 = smov 0  }
   0xa   :  { %s1885_s20 = smov 0   ;;  %s1887_s21 = smov 0  }
   0xb LB: > { %2330 = sst [smem:[#allocation16_spill]] %s1830_s20  ;;  %s1902_s22 = sadd.s32 1, %s1834_s21   ;;  %s1834_s21 = sphi %s1887_s21, %s2359_s21   ;;  %s1830_s20 = sphi %s1885_s20, %s2361_s20   ;;  %s1826_s19 = sphi %s1883_s19, %s2363_s19   ;;  %s1822_s18 = sphi %s1881_s18, %s2362_s18  }
   0xc   : > { %2331 = sst [smem:[#allocation17_spill]] %s1902_s22  ;;  %s53_s23 = sadd.s32 1, %s1830_s20 }
   0xd   : > { %s50_s24 = ssub.s32 %s1834_s21, %s1902_s22  ;;  %p2315_p0 = scmp.ne.s32.totalorder %s1830_s20, %s1826_s19 }
   0xe   : > { %p51_p1 = scmp.eq.s32.totalorder %s50_s24, 0  ;;  %p61_p2 = scmp.eq.s32.totalorder %s1834_s21, 0 }
   0xf   : > { %p1487_p4 = scmp.lt.s32.totalorder %s1834_s21, 2  ;;  %s207_s26 = sand.u32 1, %s1834_s21  }
  0x10   : > { %s1913_s25 = scalar_select %p51_p1, %s1830_s20, %s53_s23  }
  0x11   : > { %p62_p5 = por %p61_p2, %p2315_p0  ;;  %s209_s27 = sand.u32 1, %s1830_s20  }
  0x12   : > { %2332 = sst [smem:[#allocation18_spill]] %s1913_s25  ;;  %s1449_s28 = smul.u32 400, %s209_s27 }
  0x13   : > { %s1426_s29 = sshll.u32 %s1834_s21, 7  ;;  %s2333_s1 = sld [smem:[#allocation19_spill]] }
  0x14   : > { %p1926_p6 = pnand %p1487_p4, %p62_p5  ;;  %s211_s9 = scalar_lea.vmem [#allocation5], %s1449_s28 }
  0x15   : > { %s218_s10 = sshll.u32 %s211_s9, 4  ;;  %s1932_s11 = sshll.u32 %s209_s27, 1  ;;  %s1930_s10 = int_to_ptr.vmem [resolvable:$true] %s218_s10 }
  0x16   : > { %s2334_s8 = scalar_select %p1926_p6, 1, 0 }
  0x17   : > { %s1936_s12 = scalar_lea.sflag [#allocation6], %s207_s26  ;;  %p1942_p8 = pneg %p1926_p6 }
  0x19   : > { %s1924_s7 = scalar_lea.hbm %s2333_s1, %s1426_s29  ;;  %s1617_s17 = scalar_lea.hbm %s2333_s1, 12800 }
  0x1a   : > { %s1612_s13 = scalar_lea.hbm %s1924_s7, 6400  ;;  %p1618_p11 = scmp.lt.u32.totalorder %s1924_s7, %s2333_s1 }
  0x1b   : > { %p1613_p7 = scmp.ne.s32.totalorder %s1924_s7, %s1612_s13  ;;  %p1619_p12 = scmp.lt.u32.totalorder %s1617_s17, %s1612_s13 }
  0x1c   : > { %s2335_s14 = scalar_select %p1942_p8, 1, 0 }
  0x1d   : > { %p1615_p9 = pnand %p1942_p8, %p1613_p7  ;;  %p1620_p13 = por %p1619_p12, %p1618_p11 }
  0x1e   : > { %p1621_p1 = scmp.lt.u32.totalorder %s1612_s13, %s1924_s7 }
  0x1f   : > { %p1616_p10 = pneg %p1615_p9 }
  0x20   : > { %p1622_p2 = por %p1621_p1, %p1620_p13 }
  0x22   : > { %p1623_p4 = pnand %p1622_p2, %p1616_p10 }
  0x24   : > { %1626 = shalt.err (!%p1623_p4)
}
  0x25   : > { %s1627_s27 = scalar_lea.vmem %s1930_s10, 6400  ;;  %s1836_s28 = smov [#allocation5]  }
  0x26   : > { %p1628_p5 = scmp.ne.s32.totalorder %s1930_s10, %s1627_s27  ;;  %s1632_s29 = sshll.u32 %s1836_s28, 4  ;;  %s1633_s29 = int_to_ptr.vmem [resolvable:$false] %s1632_s29 }
  0x27   : > { %s1634_s30 = scalar_lea.vmem %s1633_s29, 12800  ;;  %p1635_p3 = scmp.lt.s32.totalorder %s1930_s10, %s1633_s29 }
  0x28   : > { %p1630_p7 = pnand %p1628_p5, %p1942_p8  ;;  %p1636_p0 = scmp.lt.s32.totalorder %s1634_s30, %s1627_s27 }
  0x2a   : > { %p1631_p9 = pneg %p1630_p7  ;;  %p1637_p11 = por %p1636_p0, %p1635_p3 }
  0x2c   : > { %p1638_p12 = pnand %p1637_p11, %p1631_p9 }
  0x2e   : > { %1641 = shalt.err (!%p1638_p12)
}
  0x2f   : > { %s1837_s6 = smov 256   ;;  %s1838_s9 = smov 128  }
  0x30   : > { %s1839_s13 = smov 8   ;;  %s1967_s15 = sshll.u32 %s1834_s21, 5 }
  0x31   : > { %1472 = dma.hbm_to_vmem [thread:$0]  (!%p1926_p6), %s1924_s7, 6400, %s1930_s10, %s1936_s12, %s1837_s6, %s1838_s9, %s1839_s13  }
  0x32   : > { %s2336_s3 = sld [smem:[#allocation20_spill]]  ;;  %s251_s24 = scalar_lea.vmem [#allocation8], %s1932_s11 }
  0x33   : > { %s259_s27 = sshll.u32 %s251_s24, 4  ;;  %s1978_s28 = scalar_lea.sflag [#allocation9], %s207_s26  ;;  %s260_s27 = int_to_ptr.vmem [resolvable:$true] %s259_s27 }
  0x38   : > { %s1973_s23 = scalar_lea.hbm %s2336_s3, %s1967_s15  ;;  %s1647_s30 = scalar_lea.hbm %s2336_s3, 64 }
  0x39   : > { %s1642_s29 = scalar_lea.hbm %s1973_s23, 32  ;;  %p1648_p13 = scmp.lt.u32.totalorder %s1973_s23, %s2336_s3 }
  0x3a   : > { %p1643_p0 = scmp.ne.s32.totalorder %s1973_s23, %s1642_s29  ;;  %p1649_p1 = scmp.lt.u32.totalorder %s1647_s30, %s1642_s29 }
  0x3b   : > { %p1651_p4 = scmp.lt.u32.totalorder %s1642_s29, %s1973_s23 }
  0x3c   : > { %p1645_p3 = pnand %p1643_p0, %p1942_p8  ;;  %p1650_p2 = por %p1649_p1, %p1648_p13 }
  0x3e   : > { %p1646_p10 = pneg %p1645_p3  ;;  %p1652_p5 = por %p1651_p4, %p1650_p2 }
  0x40   : > { %p1653_p7 = pnand %p1652_p5, %p1646_p10 }
  0x42   : > { %1656 = shalt.err (!%p1653_p7)
}
  0x43   : > { %s1657_s26 = scalar_lea.vmem %s260_s27, 32  ;;  %s1840_s13 = smov [#allocation8]  }
  0x44   : > { %p1658_p9 = scmp.ne.s32.totalorder %s260_s27, %s1657_s26  ;;  %s1662_s16 = sshll.u32 %s1840_s13, 4  ;;  %s1663_s16 = int_to_ptr.vmem [resolvable:$false] %s1662_s16 }
  0x45   : > { %s1664_s17 = scalar_lea.vmem %s1663_s16, 64  ;;  %p1665_p0 = scmp.lt.s32.totalorder %s260_s27, %s1663_s16 }
  0x46   : > { %p1660_p11 = pnand %p1658_p9, %p1942_p8  ;;  %p1666_p3 = scmp.lt.s32.totalorder %s1664_s17, %s1657_s26 }
  0x48   : > { %p1661_p12 = pneg %p1660_p11  ;;  %p1667_p6 = por %p1666_p3, %p1665_p0 }
  0x4a   : > { %p1668_p1 = pnand %p1667_p6, %p1661_p12 }
  0x4c   : > { %1671 = shalt.err (!%p1668_p1)
}
  0x4d   : > { %p2337_p13 = scmp.ne.s32.totalorder %s2334_s8, 0  ;;  %s1999_s24 = sadd.s32 4294967295, %s1834_s21  }
  0x4e   : > { %s1294_s29 = sadd.s32 4294967294, %s1834_s21   ;;  %p66_p6 = scmp.ne.s32.totalorder %s1826_s19, %s1822_s18 }
  0x4f   : > { %1478 = dma.hbm_to_vmem [thread:$0]  (!%p2337_p13), %s1973_s23, 32, %s260_s27, %s1978_s28  }
  0x50   : > { %p2318_p10 = scmp.eq.s32.totalorder %s1999_s24, 0  ;;  %p168_p2 = scmp.eq.s32.totalorder %s1999_s24, 1 }
  0x51   : > { %p174_p4 = scmp.eq.s32.totalorder %s1294_s29, 1  ;;  %p1295_p7 = scmp.ge.s32.totalorder %s1834_s21, 1 }
  0x52   : > { %p2008_p5 = por %p2318_p10, %p66_p6  ;;  %p2339_p9 = scmp.ne.s32.totalorder %s1830_s20, %s1826_s19 }
  0x53   : > { %p2020_p12 = por %p174_p4, %p66_p6  ;;  %p181_p0 = scmp.lt.s32.totalorder %s1834_s21, 3 }
  0x54   : > { %s2338_s7 = scalar_select %p2008_p5, 1, 0 }
  0x55   : > { %p2016_p11 = por %p168_p2, %p2339_p9  ;;  %p2025_p3 = pnand %p1295_p7, %p181_p0 }
  0x56   : > { %s2341_s27 = scalar_select %p2020_p12, 1, 0 }
  0x57   : > { %s2340_s23 = scalar_select %p2016_p11, 1, 0 }
  0x58   : > { %s2342_s10 = scalar_select %p2025_p3, 1, 0 }
  0x59   : > { %s1841_s30 = smov [#allocation2]   ;;  %p1465_p1 = pneg %p2025_p3 }
  0x5a   : > { %s193_s6 = sshll.u32 %s1841_s30, 4  ;;  %s2037_s13 = scalar_lea.hbm %s2311_s2, %s1967_s15  ;;  %s2029_s6 = int_to_ptr.vmem [resolvable:$true] %s193_s6 }
  0x5b   : > { %s232_s16 = scalar_lea.vmem [#allocation7], %s1932_s11  ;;  %p2042_p6 = pnand %p1465_p1, %p2318_p10 }
  0x5c   : > { %s240_s17 = sshll.u32 %s232_s16, 4  ;;  %s1672_s30 = scalar_lea.hbm %s2037_s13, 32  ;;  %s241_s17 = int_to_ptr.vmem [resolvable:$true] %s240_s17 }
  0x5d   : > { %s2343_s29 = scalar_select %p2042_p6, 1, 0 }
  0x5e   : > { %p1673_p2 = scmp.ne.s32.totalorder %s2037_s13, %s1672_s30  ;;  %s1677_s1 = scalar_lea.hbm %s2311_s2, 64 }
  0x5f   : > { %p1678_p9 = scmp.lt.u32.totalorder %s2037_s13, %s2311_s2  ;;  %p1679_p0 = scmp.lt.u32.totalorder %s1677_s1, %s1672_s30 }
  0x60   : > { %p1675_p4 = pnand %p1673_p2, %p1942_p8  ;;  %p1681_p1 = scmp.lt.u32.totalorder %s1672_s30, %s2037_s13 }
  0x61   : > { %p1680_p12 = por %p1679_p0, %p1678_p9 }
  0x62   : > { %p1676_p7 = pneg %p1675_p4 }
  0x63   : > { %p1682_p10 = por %p1681_p1, %p1680_p12 }
  0x65   : > { %p1683_p11 = pnand %p1682_p10, %p1676_p7 }
  0x67   : > { %1686 = shalt.err (!%p1683_p11)
}
  0x68   : > { %s1687_s16 = scalar_lea.vmem %s241_s17, 32  ;;  %s1842_s20 = smov [#allocation7]  }
  0x69   : > { %p1688_p5 = scmp.ne.s32.totalorder %s241_s17, %s1687_s16  ;;  %s1692_s22 = sshll.u32 %s1842_s20, 4  ;;  %s1693_s22 = int_to_ptr.vmem [resolvable:$false] %s1692_s22 }
  0x6a   : > { %s1694_s9 = scalar_lea.vmem %s1693_s22, 64  ;;  %p1695_p3 = scmp.lt.s32.totalorder %s241_s17, %s1693_s22 }
  0x6b   : > { %p1690_p2 = pnand %p1688_p5, %p1942_p8  ;;  %p1696_p6 = scmp.lt.s32.totalorder %s1694_s9, %s1687_s16 }
  0x6d   : > { %p1691_p4 = pneg %p1690_p2  ;;  %p1697_p13 = por %p1696_p6, %p1695_p3 }
  0x6f   : > { %p1698_p0 = pnand %p1697_p13, %p1691_p4 }
  0x71   : > { %1701 = shalt.err (!%p1698_p0)
}
  0x72   : > { %p2344_p9 = scmp.ne.s32.totalorder %s2334_s8, 0  ;;  %s1702_s25 = scalar_lea.hbm %s2309_s0, 256 }
  0x73   : > { %p1703_p10 = scmp.ne.s32.totalorder %s2309_s0, %s1702_s25  ;;  %p2345_p5 = scmp.ne.s32.totalorder %s2343_s29, 0 }
  0x74   : > { %1475 = dma.hbm_to_vmem [thread:$0]  (!%p2344_p9), %s2037_s13, 32, %s241_s17, %s1936_s12  }
  0x75   : > { %p1704_p11 = pneg %p2345_p5  ;;  %p1709_p13 = scmp.lt.u32.totalorder %s1702_s25, %s2309_s0 }
  0x77   : > { %p1705_p12 = pnand %p1704_p11, %p1703_p10 }
  0x79   : > { %p1706_p3 = pneg %p1705_p12 }
  0x7b   : > { %p1711_p6 = pnand %p1709_p13, %p1706_p3 }
  0x7d   : > { %1714 = shalt.err (!%p1711_p6)
}
  0x7e   : > { %s1715_s12 = scalar_lea.vmem %s2029_s6, 256  ;;  %p1723_p4 = scmp.lt.s32.totalorder %s2029_s6, %s2029_s6 }
  0x7f   : > { %p1716_p7 = scmp.ne.s32.totalorder %s2029_s6, %s1715_s12  ;;  %p1724_p0 = scmp.lt.s32.totalorder %s1715_s12, %s1715_s12 }
  0x81   : > { %p1718_p1 = pnand %p1716_p7, %p1704_p11  ;;  %p1725_p9 = por %p1724_p0, %p1723_p4 }
  0x83   : > { %p1719_p2 = pneg %p1718_p1 }
  0x85   : > { %p1726_p8 = pnand %p1725_p9, %p1719_p2 }
  0x87   : > { %1729 = shalt.err (!%p1726_p8)
}
  0x88   : > { %s1843_s13 = smov 64   ;;  %s1844_s17 = smov 4  }
  0x89   : > { %1468 = dma.hbm_to_vmem [thread:$0]  (!%p2345_p5), %s2309_s0, 256, %s2029_s6, [#allocation3], %s1843_s13, %s1843_s13, %s1844_s17  }
  0x8a   : > { %s2089_s25 = scalar_lea.hbm %s2313_s4, %s1967_s15  ;;  %s270_s30 = scalar_lea.vmem [#allocation10], %s1932_s11 }
  0x8b   : > { %s278_s26 = sshll.u32 %s270_s30, 4  ;;  %s1730_s20 = scalar_lea.hbm %s2089_s25, 32  ;;  %s279_s26 = int_to_ptr.vmem [resolvable:$true] %s278_s26 }
  0x8c   : > { %p1731_p8 = scmp.ne.s32.totalorder %s2089_s25, %s1730_s20  ;;  %p2346_p9 = scmp.ne.s32.totalorder %s2335_s14, 0 }
  0x8d   : > { %s1735_s6 = scalar_lea.hbm %s2313_s4, 64  ;;  %p1736_p5 = scmp.lt.u32.totalorder %s2089_s25, %s2313_s4 }
  0x8e   : > { %p1733_p10 = pnand %p1731_p8, %p2346_p9  ;;  %p1737_p12 = scmp.lt.u32.totalorder %s1735_s6, %s1730_s20 }
  0x8f   : > { %p1739_p13 = scmp.lt.u32.totalorder %s1730_s20, %s2089_s25 }
  0x90   : > { %p1734_p11 = pneg %p1733_p10  ;;  %p1738_p3 = por %p1737_p12, %p1736_p5 }
  0x92   : > { %p1740_p6 = por %p1739_p13, %p1738_p3 }
  0x94   : > { %p1741_p7 = pnand %p1740_p6, %p1734_p11 }
  0x96   : > { %1744 = shalt.err (!%p1741_p7)
}
  0x97   : > { %s1745_s11 = scalar_lea.vmem %s279_s26, 32  ;;  %s1845_s15 = smov [#allocation10]  }
  0x98   : > { %p1746_p1 = scmp.ne.s32.totalorder %s279_s26, %s1745_s11  ;;  %s1750_s17 = sshll.u32 %s1845_s15, 4  ;;  %s1751_s17 = int_to_ptr.vmem [resolvable:$false] %s1750_s17 }
  0x99   : > { %s1752_s16 = scalar_lea.vmem %s1751_s17, 64  ;;  %p1753_p0 = scmp.lt.s32.totalorder %s279_s26, %s1751_s17 }
  0x9a   : > { %p1748_p2 = pnand %p1746_p1, %p2346_p9  ;;  %p1754_p8 = scmp.lt.s32.totalorder %s1752_s16, %s1745_s11 }
  0x9c   : > { %p1749_p4 = pneg %p1748_p2  ;;  %p1755_p10 = por %p1754_p8, %p1753_p0 }
  0x9e   : > { %p1756_p5 = pnand %p1755_p10, %p1749_p4 }
  0xa0   : > { %1759 = shalt.err (!%p1756_p5)
}
  0xa1   : > { %p2347_p12 = scmp.ne.s32.totalorder %s2334_s8, 0  ;;  %p2348_p11 = scmp.ne.s32.totalorder %s2342_s10, 0 }
  0xa2   : > { %p2349_p9 = scmp.eq.s32.totalorder (!%p2348_p11), %s1999_s24, 0 }
  0xa3   : > { %1481 = dma.hbm_to_vmem [thread:$0]  (!%p2347_p12), %s2089_s25, 32, %s279_s26, %s1978_s28  }
  0xa4   : > { %287 = sbr.rel (%p2348_p11) target bundleno = 536 (0x218), region = 40 }
  0xab   : > { %1805 = dma.done.wait (%p2349_p9), [#allocation3], 256   ;;  %p2350_p3 = pmov %p2349_p9 }
  0xac   : > { %s293_s14 = sand.u32 1, %s1999_s24   ;;  %s2118_s9 = sand.u32 1, %s1826_s19  }
  0xad   : > { %1807 = vsyncadd (%p2350_p3), [#allocation3], 4294967040  ;;  %s1450_s8 = smul.u32 400, %s2118_s9  ;;  %s294_s1 = scalar_lea.sflag [#allocation6], %s293_s14 }
  0xae   : > { %p2351_p13 = scmp.ne.s32.totalorder %s2338_s7, 0 }
  0xaf   : > { %s2121_s3 = scalar_lea.vmem [#allocation5], %s1450_s8 }
  0xb0   : > { %1809 = dma.done.wait (%p2351_p13), %s294_s1, 6432  }
  0xb1   : > { %1811 = vsyncadd (%p2351_p13), %s294_s1, 4294960864  ;;  %s2128_s28 = sshll.u32 %s2118_s9, 1  ;;  %s312_s25 = scalar_lea.sflag [#allocation9], %s293_s14 }
  0xb2   : > { %s306_s10 = scalar_lea.vmem [#allocation7], %s2128_s28  ;;  %s315_s30 = scalar_lea.vmem [#allocation8], %s2128_s28 }
  0xb3   : > { %1813 = dma.done.wait (%p2351_p13), %s312_s25, 64  }
  0xb4   : > { %1815 = vsyncadd (%p2351_p13), %s312_s25, 4294967232  ;;  %v1846_v0 = vmov 0   ;;  %v1532_v1 = vld [vmem:[%s2121_s3 + $0x54] ss:$8 sps:$4 sm:$0xff]   ;;  %v1534_v2 = vld [vmem:[%s2121_s3 + $0xa4] ss:$8 sps:$4 sm:$0xff]  }
  0xb5   : > { %517 = vmatprep.mubr.bf16.mxu1 %v1846_v0  ;;  %741 = vmatprep.mubr.bf16.mxu0 %v1846_v0  ;;  %v1536_v3 = vld [vmem:[%s2121_s3 + $0x50] ss:$8 sps:$4 sm:$0xff]   ;;  %v1537_v4 = vld [vmem:[%s2121_s3 + $0xa0] ss:$8 sps:$4 sm:$0xff]   ;;  %v1538_v5 = vld [vmem:[%s2121_s3 + $0x64] ss:$8 sps:$4 sm:$0xff]  }
  0xb6   : > { %485 = vmatprep.subr.bf16.mxu1 %v1532_v1  ;;  %709 = vmatprep.subr.bf16.mxu0 %v1534_v2  ;;  %v1540_v6 = vld [vmem:[%s2121_s3 + $0xb4] ss:$8 sps:$4 sm:$0xff]   ;;  %v1542_v7 = vld [vmem:[%s2121_s3 + $0x60] ss:$8 sps:$4 sm:$0xff]   ;;  %v1543_v8 = vld [vmem:[%s2121_s3 + $0xb0] ss:$8 sps:$4 sm:$0xff]  }
  0xb7   : > { %486 = vmatpush1.bf16.msra.mxu1 %v1536_v3  ;;  %710 = vmatpush1.bf16.msra.mxu0 %v1537_v4  ;;  %v1544_v9 = vld [vmem:[%s2121_s3 + $0x74] ss:$8 sps:$4 sm:$0xff]   ;;  %v1546_v10 = vld [vmem:[%s2121_s3 + $0xc4] ss:$8 sps:$4 sm:$0xff]   ;;  %v1548_v11 = vld [vmem:[%s2121_s3 + $0x70] ss:$8 sps:$4 sm:$0xff]  }
  0xb8   : > { %487 = vmatprep.subr.bf16.mxu1 %v1538_v5  ;;  %711 = vmatprep.subr.bf16.mxu0 %v1540_v6  ;;  %v1549_v12 = vld [vmem:[%s2121_s3 + $0xc0] ss:$8 sps:$4 sm:$0xff]   ;;  %v1550_v13 = vld [vmem:[%s2121_s3 + $0x84] ss:$8 sps:$4 sm:$0xff]   ;;  %v1552_v14 = vld [vmem:[%s2121_s3 + $0xd4] ss:$8 sps:$4 sm:$0xff]  }
  0xb9   : > { %v1554_v15 = vld [vmem:[%s2121_s3 + $0x80] ss:$8 sps:$4 sm:$0xff]   ;;  %vm386_vm0 = vsmask.f32 3328  ;;  %v1555_v16 = vld [vmem:[%s2121_s3 + $0xd0] ss:$8 sps:$4 sm:$0xff]  }
  0xba   : > { %v1556_v17 = vld [vmem:[%s2121_s3 + $0x94] ss:$8 sps:$4 sm:$0xff]   ;;  %v1558_v18 = vld [vmem:[%s2121_s3 + $0xe4] ss:$8 sps:$4 sm:$0xff]   ;;  %vm387_vm1 = vsmask.f32 7440 }
  0xbb   : > { %488 = vmatpush1.bf16.msra.mxu1 %v1542_v7  ;;  %712 = vmatpush1.bf16.msra.mxu0 %v1543_v8  ;;  %v1560_v19 = vld [vmem:[%s2121_s3 + $0x90] ss:$8 sps:$4 sm:$0xff]   ;;  %v1561_v20 = vld [vmem:[%s2121_s3 + $0xe0] ss:$8 sps:$4 sm:$0xff]   ;;  %vm631_vm2 = vcmask 1042432   ;;  %vm632_vm3 = vcmask 1046532   ;;  %vm2184_vm5 = vmor %vm386_vm0, %vm387_vm1 }
  0xbc   : > { %489 = vmatprep.subr.bf16.mxu1 %v1544_v9  ;;  %713 = vmatprep.subr.bf16.mxu0 %v1546_v10  ;;  %v1564_v21 = vld [vmem:[%s2121_s3 + $0x4] ss:$8 sps:$4 sm:$0xff]   ;;  %v1567_v22 = vld [vmem:[%s2121_s3 + $0xf4] ss:$8 sps:$4 sm:$0xff]   ;;  %v2160_v23 = vld [vmem:[#allocation2] sm:$0xf] }
  0xbd   : > { %v2162_v24 = vld [vmem:[#allocation2 + $0x4] sm:$0x3]  ;;  %v2164_v25 = vld [vmem:[#allocation2 + $0x8] sm:$0xf]  ;;  %v2166_v26 = vld [vmem:[#allocation2 + $0xc] sm:$0x3] }
  0xbe   : > { %v390_v27 = vshrl.u32 %v2160_v23, 16  ;;  %v393_v28 = vshll.u32 %v2160_v23, 16  ;;  %v399_v29 = vshll.u32 %v2162_v24, 16  ;;  %v404_v30 = vshrl.u32 %v2164_v25, 16  ;;  %vm2178_vm4 = vmor %vm631_vm2, %vm632_vm3  ;;  %v1565_v50 = vld [vmem:[%s2121_s3 + $0xf0] ss:$8 sps:$4 sm:$0xff]  }
  0xbf   : > { %490 = vmatpush1.bf16.msra.mxu1 %v1548_v11  ;;  %714 = vmatpush1.bf16.msra.mxu0 %v1549_v12  ;;  %v407_v31 = vshll.u32 %v2164_v25, 16  ;;  %v413_v32 = vshll.u32 %v2166_v26, 16  ;;  %v1349_v33 = vrot.slane %v2160_v23, 9  ;;  %v636_v37 = vrot.slane %v2162_v24, 5  ;;  %v1562_v53 = vld [vmem:[%s2121_s3] ss:$8 sps:$4 sm:$0xff]  }
  0xc0   : > { %491 = vmatprep.subr.bf16.mxu1 %v1550_v13  ;;  %715 = vmatprep.subr.bf16.mxu0 %v1552_v14  ;;  %v392_v34 = vrot.slane %v390_v27, 4  ;;  %v395_v35 = vrot.slane %v393_v28, 5  ;;  %v406_v36 = vrot.slane %v404_v30, 4  ;;  %v401_v41 = vrot.slane %v399_v29, 5  ;;  %v1573_v56 = vld [vmem:[%s2121_s3 + $0x104] ss:$8 sps:$4 sm:$0xff]  }
  0xc1   : > { %v409_v38 = vrot.slane %v407_v31, 5  ;;  %v415_v44 = vrot.slane %v413_v32, 5  ;;  %v1350_v45 = vrot.slane %v2164_v25, 9  ;;  %v637_v47 = vsel %vm2178_vm4, %v1349_v33, %v636_v37  ;;  %v1570_v58 = vld [vmem:[%s2121_s3 + $0x14] ss:$8 sps:$4 sm:$0xff]   ;;  %s324_s7 = scalar_lea.vmem [#allocation10], %s2128_s28 }
  0xc2   : > { %v396_v40 = vor.u32 %v395_v35, %v392_v34  ;;  %v640_v48 = vrot.slane %v2166_v26, 5  ;;  %vm481_vm6 = vcmask 654336   ;;  %v759_v59 = vrot.slane %v390_v27, 5  ;;  %v1571_v63 = vld [vmem:[%s2121_s3 + $0x100] ss:$8 sps:$4 sm:$0xff]   ;;  %s1314_s26 = sshll.u32 %s2118_s9, 4 }
  0xc3   : > { %492 = vmatpush1.bf16.msra.mxu1 %v1554_v15  ;;  %716 = vmatpush1.bf16.msra.mxu0 %v1555_v16  ;;  %v410_v43 = vor.u32 %v409_v38, %v406_v36  ;;  %v760_v60 = vrot.slane %v393_v28, 6  ;;  %v769_v61 = vrot.slane %v404_v30, 5  ;;  %v770_v62 = vrot.slane %v407_v31, 6  ;;  %v1568_v3 = vld [vmem:[%s2121_s3 + $0x10] ss:$8 sps:$4 sm:$0xff]   ;;  %s1432_s20 = sshll.u32 %s1999_s24, 7 }
  0xc4   : > { %493 = vmatprep.subr.bf16.mxu1 %v1556_v17  ;;  %717 = vmatprep.subr.bf16.mxu0 %v1558_v18  ;;  %v397_v46 = vrot.slane %v396_v40, 4  ;;  %v641_v52 = vsel %vm2178_vm4, %v1350_v45, %v640_v48  ;;  %v763_v1 = vshrl.u32 %v2162_v24, 16  ;;  %v773_v2 = vshrl.u32 %v2166_v26, 16  ;;  %v1579_v4 = vld [vmem:[%s2121_s3 + $0x114] ss:$8 sps:$4 sm:$0xff]   ;;  %s365_s29 = scalar_lea.vmem [#allocation11], %s1314_s26  ;;  %s2263_s13 = scalar_lea.hbm %s2314_s5, %s1432_s20 }
  0xc5   : > { %v411_v49 = vrot.slane %v410_v43, 4  ;;  %v1361_v55 = vcombine.low %v637_v47, %v641_v52  ;;  %v1576_v5 = vld [vmem:[%s2121_s3 + $0x24] ss:$8 sps:$4 sm:$0xff]   ;;  %v766_v6 = vrot.slane %v399_v29, 6  ;;  %v776_v7 = vrot.slane %v413_v32, 6  ;;  %s1146_s22 = sshll.u32 %s365_s29, 4  ;;  %s2265_s22 = int_to_ptr.vmem [resolvable:$true] %s1146_s22 }
  0xc6   : > { %v402_v51 = vsel %vm2184_vm5, %v397_v46, %v401_v41  ;;  %vm756_vm7 = vsmask.f32 2304  ;;  %v1577_v8 = vld [vmem:[%s2121_s3 + $0x110] ss:$8 sps:$4 sm:$0xff]   ;;  %v761_v9 = vor.u32 %v760_v60, %v759_v59  ;;  %v765_v10 = vrot.slane %v763_v1, 5  ;;  %s1133_s24 = scalar_lea.sflag [#allocation4], %s2118_s9 }
  0xc7   : > { %494 = vmatpush1.bf16.msra.mxu1 %v1560_v19  ;;  %718 = vmatpush1.bf16.msra.mxu0 %v1561_v20  ;;  %v416_v54 = vsel %vm2184_vm5, %v411_v49, %v415_v44  ;;  %v771_v11 = vor.u32 %v770_v62, %v769_v61  ;;  %v775_v12 = vrot.slane %v773_v2, 5  ;;  %v1574_v13 = vld [vmem:[%s2121_s3 + $0x20] ss:$8 sps:$4 sm:$0xff]   ;;  %v1585_v14 = vld [vmem:[%s2121_s3 + $0x124] ss:$8 sps:$4 sm:$0xff]   ;;  %v1337_v34 = vcombine.low %v2160_v23, %v2164_v25  ;;  %s1760_s11 = scalar_lea.vmem %s2265_s22, 256 }
  0xc8   : > { %586 = vmatprep.subr.bf16.mxu1 %v1564_v21  ;;  %846 = vmatprep.subr.bf16.mxu0 %v1567_v22  ;;  %v1325_v57 = vcombine.low %v402_v51, %v416_v54  ;;  %v1582_v15 = vld [vmem:[%s2121_s3 + $0x34] ss:$8 sps:$4 sm:$0xff]   ;;  %vm757_vm8 = vsmask.f32 6416  ;;  %v1583_v16 = vld [vmem:[%s2121_s3 + $0x120] ss:$8 sps:$4 sm:$0xff]   ;;  %v767_v18 = vor.u32 %v766_v6, %v765_v10  ;;  %p1761_p6 = scmp.ne.s32.totalorder %s2265_s22, %s1760_s11 }
  0xc9   : > { %v762_v17 = vrot.slane %v761_v9, 4  ;;  %v772_v19 = vrot.slane %v771_v11, 4  ;;  %v777_v20 = vor.u32 %v776_v7, %v775_v12  ;;  %v1580_v21 = vld [vmem:[%s2121_s3 + $0x30] ss:$8 sps:$4 sm:$0xff]   ;;  %v1591_v22 = vld [vmem:[%s2121_s3 + $0x134] ss:$8 sps:$4 sm:$0xff]   ;;  %vm758_vm9 = vmor %vm756_vm7, %vm757_vm8 }
  0xca   : > { %1372 = vmatmul.mubr.msk.bf16.vlgmr.msra.gmra.mrb[0].mxu0 %vm481_vm6, %v1361_v55  ;;  %1336 = vmatmul.mubr.msk.bf16.vlgmr.msra.gmra.mrb[0].mxu1 %vm481_vm6, %v1325_v57  ;;  %v1588_v27 = vld [vmem:[%s2121_s3 + $0x44] ss:$8 sps:$4 sm:$0xff]   ;;  %v1589_v28 = vld [vmem:[%s2121_s3 + $0x130] ss:$8 sps:$4 sm:$0xff]   ;;  %v1586_v31 = vld [vmem:[%s2121_s3 + $0x40] ss:$8 sps:$4 sm:$0xff]  }
  0xcb   : > { %847 = vmatpush1.bf16.msra.mxu0 %v1565_v50  ;;  %587 = vmatpush1.bf16.msra.mxu1 %v1562_v53  ;;  %v768_v29 = vsel %vm758_vm9, %v762_v17, %v767_v18  ;;  %v778_v30 = vsel %vm758_vm9, %v772_v19, %v777_v20  ;;  %v1595_v32 = vld [vmem:[%s2121_s3 + $0x144] ss:$8 sps:$4 sm:$0xff]   ;;  %v1593_v35 = vld [vmem:[%s2121_s3 + $0x140] ss:$8 sps:$4 sm:$0xff]   ;;  %v1598_v36 = vld [vmem:[%s2121_s3 + $0x154] ss:$8 sps:$4 sm:$0xff]  }
  0xcc   : > { %848 = vmatprep.subr.bf16.mxu0 %v1573_v56  ;;  %588 = vmatprep.subr.bf16.mxu1 %v1570_v58  ;;  %v1383_v33 = vcombine.low %v768_v29, %v778_v30  ;;  %v1596_v37 = vld [vmem:[%s2121_s3 + $0x150] ss:$8 sps:$4 sm:$0xff]   ;;  %v1601_v38 = vld [vmem:[%s2121_s3 + $0x164] ss:$8 sps:$4 sm:$0xff]   ;;  %v1599_v39 = vld [vmem:[%s2121_s3 + $0x160] ss:$8 sps:$4 sm:$0xff]  }
  0xcd   : > { %618 = vmatprep.mubr.bf16.mxu1 %v1846_v0  ;;  %878 = vmatprep.mubr.bf16.mxu0 %v1846_v0  ;;  %v1604_v40 = vld [vmem:[%s2121_s3 + $0x174] ss:$8 sps:$4 sm:$0xff]   ;;  %vm893_vm10 = vcmask 1041408   ;;  %vm894_vm11 = vcmask 1045508   ;;  %v1602_v41 = vld [vmem:[%s2121_s3 + $0x170] ss:$8 sps:$4 sm:$0xff]  }
  0xce   : > { %v1395_v42 = vrot.slane %v2160_v23, 10  ;;  %v898_v43 = vrot.slane %v2162_v24, 6  ;;  %v1396_v44 = vrot.slane %v2164_v25, 10  ;;  %v902_v45 = vrot.slane %v2166_v26, 6  ;;  %v1607_v46 = vld [vmem:[%s2121_s3 + $0x184] ss:$8 sps:$4 sm:$0xff]   ;;  %vm895_vm12 = vmor %vm893_vm10, %vm894_vm11 }
  0xcf   : > { %849 = vmatpush1.bf16.msra.mxu0 %v1571_v63  ;;  %589 = vmatpush1.bf16.msra.mxu1 %v1568_v3  ;;  %v1020_v25 = vlaneseq  ;;  %v1018_v53 = vld [vmem:[%s306_s10] sm:$0x3]  ;;  %p2356_p7 = scmp.ne.s32.totalorder %s2340_s23, 0  ;;  %s1847_s15 = smov [#allocation11]  }
  0xd0   : > { %850 = vmatprep.subr.bf16.mxu0 %v1579_v4  ;;  %590 = vmatprep.subr.bf16.mxu1 %v1576_v5  ;;  %v899_v47 = vsel %vm895_vm12, %v1395_v42, %v898_v43  ;;  %v903_v48 = vsel %vm895_vm12, %v1396_v44, %v902_v45  ;;  %s1764_s17 = sshll.u32 %s1847_s15, 4  ;;  %s1765_s17 = int_to_ptr.vmem [resolvable:$false] %s1764_s17 }
  0xd1   : > { %v1407_v49 = vcombine.low %v899_v47, %v903_v48  ;;  %v1021_v52 = vshrl.u32 %v1020_v25, 7  ;;  %p1762_p1 = pnand %p1761_p6, %p2356_p7  ;;  %s1766_s16 = scalar_lea.vmem %s1765_s17, 512 }
  0xd2   : > { %p1767_p4 = scmp.lt.s32.totalorder %s2265_s22, %s1765_s17  ;;  %p1768_p0 = scmp.lt.s32.totalorder %s1766_s16, %s1760_s11 }
  0xd3   : > { %851 = vmatpush1.bf16.msra.mxu0 %v1577_v8  ;;  %591 = vmatpush1.bf16.msra.mxu1 %v1574_v13  ;;  %v2243_v26 = vsub.s32 0, %v1021_v52  ;;  %v2247_v54 = vsub.s32 1, %v1021_v52  ;;  %p1763_p2 = pneg %p1762_p1 }
  0xd4   : > { %852 = vmatprep.subr.bf16.mxu0 %v1585_v14  ;;  %592 = vmatprep.subr.bf16.mxu1 %v1582_v15  ;;  %p1769_p8 = por %p1768_p0, %p1767_p4 }
  0xd5   : > { %v1023_v57 = vrot.slane %v1018_v53, %v2243_v26  ;;  %v1027_v60 = vrot.slane %v1018_v53, %v2247_v54 }
  0xd6   : > { %p1770_p10 = pnand %p1769_p8, %p1763_p2 }
  0xd7   : > { %853 = vmatpush1.bf16.msra.mxu0 %v1583_v16  ;;  %593 = vmatpush1.bf16.msra.mxu1 %v1580_v21 }
  0xd8   : > { %854 = vmatprep.subr.bf16.mxu0 %v1591_v22  ;;  %594 = vmatprep.subr.bf16.mxu1 %v1588_v27 }
  0xdb   : > { %855 = vmatpush1.bf16.msra.mxu0 %v1589_v28  ;;  %595 = vmatpush1.bf16.msra.mxu1 %v1586_v31 }
  0xdc   : > { %971 = vmatprep.subr.bf16.mxu0 %v1595_v32 }
  0xde   : > { %1394 = vmatmul.mubr.msk.bf16.vlgmr.msra.gmra.mrb[0].mxu0 %vm481_vm6, %v1383_v33  ;;  %1348 = vmatmul.mubr.msk.bf16.vlgmr.msra.gmra.mrb[0].mxu1 %vm481_vm6, %v1337_v34 }
  0xdf   : > { %972 = vmatpush1.bf16.msra.mxu0 %v1593_v35  ;;  %1003 = vmatprep.mubr.bf16.mxu0 %v1846_v0  ;;  %v1605_v0 = vld [vmem:[%s2121_s3 + $0x180] ss:$8 sps:$4 sm:$0xff]  }
  0xe0   : > { %973 = vmatprep.subr.bf16.mxu0 %v1598_v36 }
  0xe3   : > { %974 = vmatpush1.bf16.msra.mxu0 %v1596_v37 }
  0xe4   : > { %975 = vmatprep.subr.bf16.mxu0 %v1601_v38 }
  0xe7   : > { %976 = vmatpush1.bf16.msra.mxu0 %v1599_v39 }
  0xe8   : > { %977 = vmatprep.subr.bf16.mxu0 %v1604_v40 }
  0xeb   : > { %978 = vmatpush1.bf16.msra.mxu0 %v1602_v41 }
  0xec   : > { %979 = vmatprep.subr.bf16.mxu0 %v1607_v46 }
  0xef   : > { %980 = vmatpush1.bf16.msra.mxu0 %v1605_v0 }
  0xf2   : > { %1418 = vmatmul.mubr.msk.bf16.vlgmr.msra.gmra.mrb[0].mxu0 %vm481_vm6, %v1407_v49 }
 0x1b1   : > { %v620_v23 = vpop.f32.mrb[0].mxu1 }
 0x1b2   : > { %v622_v50 = vpop.f32.mrb[1].mxu1 }
 0x1b3   : > { %v624_v24 = vpop.f32.mrb[2].mxu1 }
 0x1b4   : > { %v626_v51 = vpop.f32.mrb[3].mxu1 }
 0x1c5   : > { %v1005_v55 = vpop.f32.mrb[0].mxu0 }
 0x1c6   : > { %v1433_v56 = vadd.f32 %v1005_v55, %v620_v23  ;;  %v1007_v58 = vpop.f32.mrb[1].mxu0 }
 0x1c7   : > { %v1434_v59 = vadd.f32 %v1007_v58, %v622_v50  ;;  %v1009_v61 = vpop.f32.mrb[2].mxu0  ;;  %v1082_v50 = vld [vmem:[%s315_s30] sm:$0x3] }
 0x1c8   : > { %v1435_v62 = vadd.f32 %v1009_v61, %v624_v24  ;;  %v1011_v63 = vpop.f32.mrb[3].mxu0  ;;  %v1030_v2 = vadd.f32 %v1433_v56, %v1023_v57  ;;  %v1098_v24 = vld [vmem:[%s324_s7] sm:$0x3]  ;;  %v1091_v52 = vrot.slane %v1082_v50, %v2247_v54 }
 0x1c9   : > { %v1436_v1 = vadd.f32 %v1011_v63, %v626_v51  ;;  %v1031_v4 = vadd.f32 %v1434_v59, %v1027_v60  ;;  %v1087_v51 = vrot.slane %v1082_v50, %v2243_v26 }
 0x1ca   : > { %v1032_v3 = vadd.f32 %v1435_v62, %v1023_v57  ;;  %v1103_v57 = vrot.slane %v1098_v24, %v2243_v26 }
 0x1cb   : > { %v1033_v5 = vadd.f32 %v1436_v1, %v1027_v60  ;;  %v1107_v60 = vrot.slane %v1098_v24, %v2247_v54 }
 0x1cc   : > { %v1034_v6 = vadd.f32 %v1032_v3, %v1030_v2 }
 0x1cd   : > { %v1041_v7 = vadd.f32 %v1033_v5, %v1031_v4 }
 0x1ce   : > { %v1035_v8 = vrot.slane %v1034_v6, 4 }
 0x1cf   : > { %v1042_v9 = vrot.slane %v1041_v7, 4 }
 0x1d0   : > { %v1036_v10 = vadd.f32 %v1035_v8, %v1034_v6 }
 0x1d1   : > { %v1043_v11 = vadd.f32 %v1042_v9, %v1041_v7 }
 0x1d2   : > { %v1037_v12 = vrot.slane %v1036_v10, 2 }
 0x1d3   : > { %v1044_v13 = vrot.slane %v1043_v11, 2 }
 0x1d4   : > { %v1038_v14 = vadd.f32 %v1037_v12, %v1036_v10 }
 0x1d5   : > { %v1045_v15 = vadd.f32 %v1044_v13, %v1043_v11 }
 0x1d6   : > { %v1039_v16 = vrot.slane %v1038_v14, 1 }
 0x1d7   : > { %v1046_v17 = vrot.slane %v1045_v15, 1 }
 0x1d8   : > { %v1040_v18 = vadd.f32 %v1039_v16, %v1038_v14 }
 0x1d9   : > { %v1047_v19 = vadd.f32 %v1046_v17, %v1045_v15 }
 0x1da   : > { %v1048_v20 = vmul.f32 0.0625, %v1040_v18 }
 0x1db   : > { %v1049_v21 = vmul.f32 0.0625, %v1047_v19 }
 0x1dc   : > { %v1050_v22 = vsub.f32 %v1030_v2, %v1048_v20  ;;  %v1052_v27 = vsub.f32 %v1032_v3, %v1048_v20 }
 0x1dd   : > { %v1051_v28 = vsub.f32 %v1031_v4, %v1049_v21  ;;  %v1053_v29 = vsub.f32 %v1033_v5, %v1049_v21 }
 0x1de   : > { %v1054_v30 = vmul.f32 %v1050_v22, %v1050_v22  ;;  %v1056_v31 = vmul.f32 %v1052_v27, %v1052_v27 }
 0x1df   : > { %v1055_v32 = vmul.f32 %v1051_v28, %v1051_v28  ;;  %v1057_v33 = vmul.f32 %v1053_v29, %v1053_v29 }
 0x1e0   : > { %v1058_v34 = vadd.f32 %v1056_v31, %v1054_v30 }
 0x1e1   : > { %v1065_v35 = vadd.f32 %v1057_v33, %v1055_v32 }
 0x1e2   : > { %v1059_v36 = vrot.slane %v1058_v34, 4 }
 0x1e3   : > { %v1066_v37 = vrot.slane %v1065_v35, 4 }
 0x1e4   : > { %v1060_v38 = vadd.f32 %v1059_v36, %v1058_v34 }
 0x1e5   : > { %v1067_v39 = vadd.f32 %v1066_v37, %v1065_v35 }
 0x1e6   : > { %v1061_v40 = vrot.slane %v1060_v38, 2 }
 0x1e7   : > { %v1068_v41 = vrot.slane %v1067_v39, 2 }
 0x1e8   : > { %v1062_v42 = vadd.f32 %v1061_v40, %v1060_v38 }
 0x1e9   : > { %v1069_v43 = vadd.f32 %v1068_v41, %v1067_v39 }
 0x1ea   : > { %v1063_v44 = vrot.slane %v1062_v42, 1 }
 0x1eb   : > { %v1070_v45 = vrot.slane %v1069_v43, 1 }
 0x1ec   : > { %v1064_v46 = vadd.f32 %v1063_v44, %v1062_v42 }
 0x1ed   : > { %v1071_v0 = vadd.f32 %v1070_v45, %v1069_v43 }
 0x1ee   : > { %v1072_v47 = vmul.f32 0.0625, %v1064_v46 }
 0x1ef   : > { %v1073_v48 = vmul.f32 0.0625, %v1071_v0 }
 0x1f0   : > { %v1074_v49 = vadd.f32 1e-05, %v1072_v47 }
 0x1f1   : > { %v1075_v23 = vadd.f32 1e-05, %v1073_v48 }
 0x1f2   : > { %1608 = vrsqrt.f32 %v1074_v49 }
 0x1f3   : > { %1610 = vrsqrt.f32 %v1075_v23 }
 0x1fc   : > { %v1609_v25 = vpop.eup %1608 }
 0x1fd   : > { %v1611_v53 = vpop.eup %1610  ;;  %v1078_v55 = vmul.f32 %v1609_v25, %v1050_v22  ;;  %v1080_v56 = vmul.f32 %v1609_v25, %v1052_v27 }
 0x1fe   : > { %v1079_v58 = vmul.f32 %v1611_v53, %v1051_v28  ;;  %v1081_v59 = vmul.f32 %v1611_v53, %v1053_v29 }
 0x1ff   : > { %v1094_v61 = vmul.f32 %v1087_v51, %v1078_v55  ;;  %v1096_v62 = vmul.f32 %v1087_v51, %v1080_v56 }
 0x200   : > { %v1095_v63 = vmul.f32 %v1091_v52, %v1079_v58  ;;  %v1097_v1 = vmul.f32 %v1091_v52, %v1081_v59 }
 0x201   : > { %v1110_v2 = vadd.f32 %v1103_v57, %v1094_v61  ;;  %v1112_v3 = vadd.f32 %v1103_v57, %v1096_v62 }
 0x202   : > { %v1111_v4 = vadd.f32 %v1107_v60, %v1095_v63  ;;  %v1113_v5 = vadd.f32 %v1107_v60, %v1097_v1 }
 0x203   : > { %v1114_v6 = vmax.f32 %v1110_v2, 0.0  ;;  %v1116_v7 = vmax.f32 %v1112_v3, 0.0 }
 0x204   : > { %v1115_v26 = vmax.f32 %v1111_v4, 0.0  ;;  %v1117_v8 = vmax.f32 %v1113_v5, 0.0 }
 0x206   : > { %v1430_v54 = vpack.c.bf16 %v1115_v26, %v1114_v6  ;;  %v1431_v9 = vpack.c.bf16 %v1117_v8, %v1116_v7 }
 0x208   : > { %1131 = vst [vmem:[%s365_s29 + $0x8] sm:$0xff] %v1431_v9  ;;  %1130 = vst [vmem:[%s365_s29] sm:$0xff] %v1430_v54 }
 0x209   : > { %1773 = shalt.err (!%p1770_p10)
}
 0x20a   : > { %s1774_s14 = scalar_lea.hbm %s2263_s13, 256  ;;  %s1778_s3 = scalar_lea.hbm %s2314_s5, 512 }
 0x20b   : > { %p1775_p5 = scmp.ne.s32.totalorder %s2263_s13, %s1774_s14  ;;  %p1779_p9 = scmp.lt.u32.totalorder %s2263_s13, %s2314_s5 }
 0x20c   : > { %p1780_p3 = scmp.lt.u32.totalorder %s1778_s3, %s1774_s14  ;;  %p1782_p6 = scmp.lt.u32.totalorder %s1774_s14, %s2263_s13 }
 0x20d   : > { %p1776_p12 = pnand %p1775_p5, %p2356_p7 }
 0x20e   : > { %p1781_p13 = por %p1780_p3, %p1779_p9 }
 0x20f   : > { %p1777_p11 = pneg %p1776_p12 }
 0x210   : > { %p1783_p1 = por %p1782_p6, %p1781_p13 }
 0x212   : > { %p1784_p2 = pnand %p1783_p1, %p1777_p11 }
 0x214   : > { %1787 = shalt.err (!%p1784_p2)
}
 0x215   : > { %s1848_s25 = smov 128   ;;  %s1849_s30 = smov 256  }
 0x216   : > { %s1850_s7 = smov 8  }
 0x217   : > { %1463 = dma.vmem_to_hbm [thread:$0]  (%p2356_p7), %s2265_s22, 256, %s2263_s13, %s1133_s24, %s1848_s25, %s1849_s30, %s1850_s7  }
 0x218 PF: > { %s1161_s26 = sand.u32 1, %s1822_s18   ;;  %p2357_p4 = scmp.ne.s32.totalorder %s2341_s27, 0 }
 0x219   : > { %p2358_p0 = scmp.ge.s32.totalorder %s1834_s21, 2  ;;  %s1162_s20 = scalar_lea.sflag [#allocation4], %s1161_s26 }
 0x21b   : > { %p1483_p8 = pnand %p2358_p0, %p2357_p4 }
 0x21d   : > { %1817 = dma.done.wait (!%p1483_p8), %s1162_s20, 256  }
 0x21e   : > { %1819 = vsyncadd (!%p1483_p8), %s1162_s20, 4294967040  ;;  %s2359_s21 = sld [smem:[#allocation17_spill]]  ;;  %s2360_s29 = sld [smem:[#allocation16_spill]] }
 0x21f   : > { %s2361_s20 = sld [smem:[#allocation18_spill]]  ;;  %s2362_s18 = smov %s1826_s19 }
 0x224   : > { %p22_p10 = scmp.ge.s32.totalorder %s2359_s21, 4   ;;  %s2363_s19 = smov %s2360_s29 }
 0x226   :  { %24 = sbr.rel (!%p22_p10) target bundleno = 11 (0xb), region = 129 }
 0x22d   :  { %1167 = vsyncpa [#allocation3], 1 }
 0x22e   :  { %1169 = vsyncpa [#allocation3 + $0x1], 1 }
 0x22f   :  { %1170 = vsyncpa [#allocation6], 1 }
 0x230   :  { %1172 = vsyncpa [#allocation6 + $0x1], 1 }
 0x231   :  { %1173 = vsyncpa [#allocation9], 1 }
 0x232   :  { %1175 = vsyncpa [#allocation9 + $0x1], 1 }
 0x233   :  { %1176 = vsyncpa [#allocation4], 1 }
 0x234   :  { %1178 = vsyncpa [#allocation4 + $0x1], 1 }

</bundles_post_ra>
